<compile_context>
chip_gen: v7x
topology: tpu7x:2x2x1
jax: 0.10.0
libtpu: 0.0.40
codegen_flags: <defaults>
</compile_context>

<pallas_src>
import jax
import jax.numpy as jnp
from jax.experimental import pallas as pl
from jax.experimental.pallas import tpu as pltpu

LANES = 128
SUBLANES = 8
MAX_ROW_TILE = 2048   # (2048,128) f32 block = 1 MiB; 2 inputs x 2 bufs = 4 MiB VMEM
NUM_SHARDS = 2        # leading "parallel" grid axis (both TCs on v7x)


def _mse_sum_kernel(pred_ref, tgt_ref, out_ref):
    """Accumulates sum((pred - tgt)^2) over the inner (reduction) grid axis.

    out_ref : (8, 128) f32 per-shard partial sums; its block index depends only
              on the shard axis, so it stays resident across the reduction axis
              and is used directly as the accumulator.
    """
    k = pl.program_id(1)

    @pl.when(k == 0)
    def _init():
        out_ref[...] = jnp.zeros_like(out_ref)

    diff = pred_ref[...].astype(jnp.float32) - tgt_ref[...].astype(jnp.float32)
    sq = diff * diff
    # Fold the (row_tile, 128) block down to one (8, 128) tile: this reshape
    # only groups whole sublane tiles, and the axis-0 sum is a tree of vreg
    # adds on the VPU (no XLU cross-lane work per step).
    out_ref[...] += jnp.sum(sq.reshape(-1, SUBLANES, LANES), axis=0)


def _bulk_sq_diff_sum(pred2d, tgt2d):
    """Kernel-computed sum of squared diffs over the leading aligned rows.

    pred2d / tgt2d: (rows, 128). Only the first `rows_bulk` rows are read,
    where rows_bulk is the largest count divisible by num_shards * row_tile.
    Returns (f32 scalar sum, rows_bulk).
    """
    rows = pred2d.shape[0]
    rows_aligned = (rows // SUBLANES) * SUBLANES
    assert rows_aligned >= SUBLANES
    row_tile = min(MAX_ROW_TILE, rows_aligned)
    total_tiles = rows_aligned // row_tile
    num_shards = NUM_SHARDS if total_tiles >= NUM_SHARDS else 1
    tiles_per_shard = total_tiles // num_shards
    rows_bulk = num_shards * tiles_per_shard * row_tile

    def in_map(s, k):
        return (s * tiles_per_shard + k, 0)

    partial = pl.pallas_call(
        _mse_sum_kernel,
        out_shape=jax.ShapeDtypeStruct((num_shards * SUBLANES, LANES), jnp.float32),
        grid_spec=pltpu.PrefetchScalarGridSpec(
            num_scalar_prefetch=0,
            grid=(num_shards, tiles_per_shard),
            in_specs=[
                pl.BlockSpec((row_tile, LANES), in_map),
                pl.BlockSpec((row_tile, LANES), in_map),
            ],
            out_specs=pl.BlockSpec((SUBLANES, LANES), lambda s, k: (s, 0)),
        ),
        compiler_params=pltpu.CompilerParams(
            dimension_semantics=("parallel", "arbitrary"),
        ),
    )(pred2d, tgt2d)
    # Tiny final cross-lane reduce (num_shards*8 x 128 elements) in plain jnp.
    return jnp.sum(partial), rows_bulk


def mse(pred: jax.Array, target: jax.Array) -> jax.Array:
    """Computes mean((pred - target)^2) over all elements, returns f32 scalar."""
    assert pred.shape == target.shape, "shapes must match (no broadcasting needed)"
    n = pred.size
    pred_f = pred.reshape(-1)
    tgt_f = target.reshape(-1)

    rows_total = n // LANES

    if rows_total >= SUBLANES:
        if n % LANES == 0:
            # Zero-copy: flat array reshapes directly to (rows, 128).
            p2d = pred_f.reshape(rows_total, LANES)
            t2d = tgt_f.reshape(rows_total, LANES)
        else:
            # Non-lane-divisible length: slice the aligned prefix for the kernel.
            m = rows_total * LANES
            p2d = pred_f[:m].reshape(rows_total, LANES)
            t2d = tgt_f[:m].reshape(rows_total, LANES)
        bulk_sum, rows_bulk = _bulk_sq_diff_sum(p2d, t2d)
        n_bulk = rows_bulk * LANES
        if n_bulk < n:
            # Small remainder (< num_shards * row_tile * 128 elements) in plain jnp.
            tp = pred_f[n_bulk:].astype(jnp.float32)
            tt = tgt_f[n_bulk:].astype(jnp.float32)
            total = bulk_sum + jnp.sum(jnp.square(tp - tt))
        else:
            total = bulk_sum
    else:
        # Tiny input (< 1024 elements): pad up to one (8, 128) tile; the zero
        # padding contributes nothing to the sum of squared diffs.
        pad = SUBLANES * LANES - n
        p2d = jnp.concatenate(
            [pred_f, jnp.zeros((pad,), pred_f.dtype)]).reshape(SUBLANES, LANES)
        t2d = jnp.concatenate(
            [tgt_f, jnp.zeros((pad,), tgt_f.dtype)]).reshape(SUBLANES, LANES)
        total, _ = _bulk_sq_diff_sum(p2d, t2d)

    return total / n


if __name__ == "__main__":
    key = jax.random.PRNGKey(0)
    k1, k2 = jax.random.split(key)
    # Small shapes consistent with a generic prediction/target pair.
    x_shape = (2, 4, 16, 16)
    pred = jax.random.normal(k1, x_shape, dtype=jnp.float32)
    target = jax.random.normal(k2, x_shape, dtype=jnp.float32)

    result = mse(pred, target)
    jax.block_until_ready(result)

    # Reference check against plain JAX.
    ref = jnp.mean(jnp.square(pred - target))
    assert jnp.allclose(result, ref, rtol=1e-5, atol=1e-6), (result, ref)
    print("KERNEL_OK")
</pallas_src>

<mosaic_0001>
module attributes {stable_mosaic.version = 11 : i64} {
  func.func @_mse_sum_kernel(%arg0: i32, %arg1: i32, %arg2: memref<16x128xf32, #tpu.memory_space<vmem>>, %arg3: memref<16x128xf32, #tpu.memory_space<vmem>>, %arg4: memref<8x128xf32, #tpu.memory_space<vmem>>) attributes {dimension_semantics = [#tpu.dimension_semantics<parallel>, #tpu.dimension_semantics<arbitrary>], iteration_bounds = array<i64: 1, 1>, scalar_prefetch = 0 : i64, scratch_operands = 0 : i64, tpu.core_type = #tpu.core_type<tc>, window_params = [{transform_indices = @transform_0, window_bounds = array<i64: 16, 128>}, {transform_indices = @transform_1, window_bounds = array<i64: 16, 128>}, {transform_indices = @transform_2, window_bounds = array<i64: 8, 128>}]} {
    %c0_i32 = arith.constant 0 : i32
    %0 = arith.cmpi eq, %arg1, %c0_i32 : i32
    %1 = arith.extui %0 : i1 to i32
    %c0_i32_0 = arith.constant 0 : i32
    %2 = arith.cmpi ne, %1, %c0_i32_0 : i32
    scf.if %2 {
      %cst_8 = arith.constant 0.000000e+00 : f32
      %12 = vector.broadcast %cst_8 : f32 to vector<8x128xf32>
      %c0_9 = arith.constant 0 : index
      %c0_10 = arith.constant 0 : index
      %13 = vector.load %arg4[%c0_9, %c0_10] : memref<8x128xf32, #tpu.memory_space<vmem>>, vector<8x128xf32>
      tpu.vector_store %arg4[%c0_9, %c0_10], %12 {strides = array<i32>} : memref<8x128xf32, #tpu.memory_space<vmem>>, vector<8x128xf32>,
    } else {
    }
    %c0 = arith.constant 0 : index
    %c0_1 = arith.constant 0 : index
    %3 = vector.load %arg2[%c0, %c0_1] : memref<16x128xf32, #tpu.memory_space<vmem>>, vector<16x128xf32>
    %c0_2 = arith.constant 0 : index
    %c0_3 = arith.constant 0 : index
    %4 = vector.load %arg3[%c0_2, %c0_3] : memref<16x128xf32, #tpu.memory_space<vmem>>, vector<16x128xf32>
    %5 = arith.subf %3, %4 : vector<16x128xf32>
    %6 = arith.mulf %5, %5 : vector<16x128xf32>
    %c0_4 = arith.constant 0 : index
    %c0_5 = arith.constant 0 : index
    %7 = vector.load %arg4[%c0_4, %c0_5] : memref<8x128xf32, #tpu.memory_space<vmem>>, vector<8x128xf32>
    %8 = vector.shape_cast %6 : vector<16x128xf32> to vector<2x8x128xf32>
    %cst = arith.constant dense<0.000000e+00> : vector<8x128xf32>
    %9 = vector.multi_reduction <add>, %8, %cst [0] : vector<2x8x128xf32> to vector<8x128xf32>
    %10 = arith.addf %7, %9 : vector<8x128xf32>
    %c0_6 = arith.constant 0 : index
    %c0_7 = arith.constant 0 : index
    %11 = vector.load %arg4[%c0_6, %c0_7] : memref<8x128xf32, #tpu.memory_space<vmem>>, vector<8x128xf32>
    tpu.vector_store %arg4[%c0_6, %c0_7], %10 {strides = array<i32>} : memref<8x128xf32, #tpu.memory_space<vmem>>, vector<8x128xf32>,
    return
  }
  func.func @transform_0(%arg0: i32, %arg1: i32) -> (i32, i32) {
    %c1_i32 = arith.constant 1 : i32
    %0 = arith.muli %arg0, %c1_i32 : i32
    %1 = arith.addi %0, %arg1 : i32
    %c0_i32 = arith.constant 0 : i32
    %c0_i32_0 = arith.constant 0 : i32
    return %1, %c0_i32 : i32, i32
  }
  func.func @transform_1(%arg0: i32, %arg1: i32) -> (i32, i32) {
    %c1_i32 = arith.constant 1 : i32
    %0 = arith.muli %arg0, %c1_i32 : i32
    %1 = arith.addi %0, %arg1 : i32
    %c0_i32 = arith.constant 0 : i32
    %c0_i32_0 = arith.constant 0 : i32
    return %1, %c0_i32 : i32, i32
  }
  func.func @transform_2(%arg0: i32, %arg1: i32) -> (i32, i32) {
    %c0_i32 = arith.constant 0 : i32
    %c0_i32_0 = arith.constant 0 : i32
    return %arg0, %c0_i32 : i32, i32
  }
}

</mosaic_0001>

<bundles_post_ra>
// kernel: tpu_custom_call.1
= control target key start
LH: loop header
LB: loop body
LE: loop exit
PB: predicated region body
PF: predicated region fallthrough
CT: control target
= control target key end

     0   :  { %7 = vsyncpa [#allocation3], 0  ;;  %s219_s0 = inlined_call_operand.hbm [shape: f32[16,128], index: 0, kind: input, shape index: {}]   ;;  %s220_s1 = inlined_call_operand.hbm [shape: f32[16,128], index: 1, kind: input, shape index: {}]   ;;  %s221_s2 = inlined_call_operand.hbm [shape: f32[8,128], index: 2, kind: output, shape index: {}]  }
   0x1   :  { %8 = vsyncpa [#allocation6], 0 }
   0x2   :  { %9 = vsyncpa [#allocation4], 0  ;;  %s163_s9 = smov [#allocation2]   ;;  %s91_s13 = scalar_lea.hbm %s219_s0, 256 }
   0x3   :  { %s19_s10 = sshll.u32 %s163_s9, 4  ;;  %p92_p0 = scmp.ne.s32.totalorder %s219_s0, %s91_s13  ;;  %s20_s10 = int_to_ptr.vmem [resolvable:$true] %s19_s10 }
   0x4   :  { %p95_p1 = scmp.lt.u32.totalorder %s91_s13, %s219_s0 }
   0x6   :  { %p97_p2 = pnand %p95_p1, %p92_p0 }
   0x8   :  { %100 = shalt.err (!%p97_p2)
}
   0x9   :  { %s101_s18 = scalar_lea.vmem %s20_s10, 256  ;;  %p106_p4 = scmp.lt.s32.totalorder %s20_s10, %s20_s10 }
   0xa   :  { %p102_p3 = scmp.ne.s32.totalorder %s20_s10, %s101_s18  ;;  %p107_p5 = scmp.lt.s32.totalorder %s101_s18, %s101_s18 }
   0xc   :  { %p108_p6 = por %p107_p5, %p106_p4 }
   0xe   :  { %p109_p7 = pnand %p108_p6, %p102_p3 }
  0x10   :  { %112 = shalt.err (!%p109_p7)
}
  0x11   :  { %s164_s19 = smov 128   ;;  %s165_s20 = smov 8  }
  0x12   :  { %25 = dma.hbm_to_vmem [thread:$0]  %s219_s0, 256, %s20_s10, [#allocation3], %s164_s19, %s164_s19, %s165_s20  }
  0x13   :  { %s166_s23 = smov [#allocation5]   ;;  %s113_s27 = scalar_lea.hbm %s220_s1, 256 }
  0x14   :  { %s35_s24 = sshll.u32 %s166_s23, 4  ;;  %p114_p8 = scmp.ne.s32.totalorder %s220_s1, %s113_s27  ;;  %s36_s24 = int_to_ptr.vmem [resolvable:$true] %s35_s24 }
  0x15   :  { %p117_p9 = scmp.lt.u32.totalorder %s113_s27, %s220_s1 }
  0x17   :  { %p119_p10 = pnand %p117_p9, %p114_p8 }
  0x19   :  { %122 = shalt.err (!%p119_p10)
}
  0x1a   :  { %s123_s4 = scalar_lea.vmem %s36_s24, 256  ;;  %p128_p12 = scmp.lt.s32.totalorder %s36_s24, %s36_s24 }
  0x1b   :  { %p124_p11 = scmp.ne.s32.totalorder %s36_s24, %s123_s4  ;;  %p129_p13 = scmp.lt.s32.totalorder %s123_s4, %s123_s4 }
  0x1d   :  { %p130_p0 = por %p129_p13, %p128_p12 }
  0x1f   :  { %p131_p1 = pnand %p130_p0, %p124_p11 }
  0x21   :  { %134 = shalt.err (!%p131_p1)
}
  0x22   :  { %41 = dma.hbm_to_vmem [thread:$0]  %s220_s1, 256, %s36_s24, [#allocation6], %s164_s19, %s164_s19, %s165_s20  }
  0x23   :  { %157 = dma.done.wait [#allocation3], 256  }
  0x24   :  { %158 = vsyncadd [#allocation3], 4294967040 }
  0x25   :  { %159 = dma.done.wait [#allocation6], 256  }
  0x26   :  { %160 = vsyncadd [#allocation6], 4294967040  ;;  %v57_v0 = vld [vmem:[#allocation2] sm:$0xff]  ;;  %v58_v1 = vld [vmem:[#allocation2 + $0x8] sm:$0xff]  ;;  %s167_s6 = smov [#allocation7]  }
  0x27   :  { %v59_v2 = vld [vmem:[#allocation5] sm:$0xff]  ;;  %v60_v3 = vld [vmem:[#allocation5 + $0x8] sm:$0xff]  ;;  %s75_s7 = sshll.u32 %s167_s6, 4  ;;  %s76_s7 = int_to_ptr.vmem [resolvable:$true] %s75_s7 }
  0x28   :  { %v61_v4 = vsub.f32 %v57_v0, %v59_v2  ;;  %v62_v5 = vsub.f32 %v58_v1, %v60_v3  ;;  %s135_s8 = scalar_lea.vmem %s76_s7, 128  ;;  %p140_p3 = scmp.lt.s32.totalorder %s76_s7, %s76_s7 }
  0x29   :  { %p136_p2 = scmp.ne.s32.totalorder %s76_s7, %s135_s8  ;;  %p141_p4 = scmp.lt.s32.totalorder %s135_s8, %s135_s8 }
  0x2a   :  { %v63_v6 = vmul.f32 %v61_v4, %v61_v4  ;;  %v64_v7 = vmul.f32 %v62_v5, %v62_v5 }
  0x2b   :  { %p142_p5 = por %p141_p4, %p140_p3 }
  0x2c   :  { %v66_v8 = vadd.f32 %v64_v7, %v63_v6 }
  0x2d   :  { %p143_p6 = pnand %p142_p5, %p136_p2 }
  0x2e   :  { %68 = vst [vmem:[#allocation7] sm:$0xff] %v66_v8 }
  0x2f   :  { %146 = shalt.err (!%p143_p6)
}
  0x30   :  { %s147_s10 = scalar_lea.hbm %s221_s2, 128 }
  0x31   :  { %p148_p7 = scmp.ne.s32.totalorder %s221_s2, %s147_s10  ;;  %p151_p8 = scmp.lt.u32.totalorder %s147_s10, %s221_s2 }
  0x33   :  { %p153_p9 = pnand %p151_p8, %p148_p7 }
  0x35   :  { %156 = shalt.err (!%p153_p9)
}
  0x36   :  { %78 = dma.vmem_to_hbm [thread:$0]  %s76_s7, 128, %s221_s2, [#allocation4]  }
  0x37   :  { %161 = dma.done.wait [#allocation4], 128  }
  0x38   :  { %162 = vsyncadd [#allocation4], 4294967168 }
  0x39   :  { %82 = vsyncpa [#allocation3], 1 }
  0x3a   :  { %83 = vsyncpa [#allocation6], 1 }
  0x3b   :  { %84 = vsyncpa [#allocation4], 1 }

</bundles_post_ra>
